<compile_context>
chip_gen: v7x
topology: tpu7x:2x2x1
jax: 0.10.0
libtpu: 0.0.40
codegen_flags: <defaults>
</compile_context>

<pallas_src>
import math
import numpy as np

import jax
import jax.numpy as jnp
from jax.experimental import pallas as pl
from jax.experimental.pallas import tpu as pltpu


def _round_up(x, m):
    return ((x + m - 1) // m) * m


def _cdiv(a, b):
    return (a + b - 1) // b


def _pow_static(x, p):
    """x**p for small static integer p >= 1, via square-and-multiply (statically unrolled)."""
    result = None
    base = x
    e = int(p)
    while e > 0:
        if e & 1:
            result = base if result is None else result * base
        e >>= 1
        if e:
            base = base * base
    return result


def _make_kernel(norm_const, inv_r_max, p_int):
    p = float(p_int)
    c_p = (p + 1.0) * (p + 2.0) / 2.0
    c_p1 = p * (p + 2.0)
    c_p2 = p * (p + 1.0) / 2.0

    def kernel(d_ref, freq_ref, o_ref):
        d = d_ref[...]                          # (1, T) edge lengths (pad value 1.0, d > 0)

        # --- PolynomialCutoff envelope, once per edge on the (1, T) row (Horner form) ---
        x = d * inv_r_max
        xp = _pow_static(x, p_int)              # x^p via square-and-multiply (3 muls @ p=6)
        poly = c_p - x * (c_p1 - c_p2 * x)      # c_p - c_p1*x + c_p2*x^2
        env = 1.0 - xp * poly
        env = jnp.where(x < 1.0, env, 0.0)

        # --- 1/d on the EUP (approx) + one Newton-Raphson refinement step ---
        r = pl.reciprocal(d, approx=True)
        r = r * (2.0 - d * r)                   # ~6e-8 relative error after refinement

        scale = (norm_const * env) * r          # (1, T) per-edge prefactor

        # --- radial expansion: (R, 1) x (1, T) broadcast, one sin per output element ---
        # TODO(synk): if frequencies are known to stay at pi*(k+1) (inference), a Chebyshev
        # sin-recurrence along sublanes would cut the transcendental count ~4-8x.
        freq = freq_ref[...]                    # (R, 1) trainable frequencies
        o_ref[...] = (scale * jnp.sin(freq * d)).astype(o_ref.dtype)

    return kernel


def spherical_bessel_edge_embedding(edge_length, frequencies, *, r_max, p=6,
                                    tile_edges=32768, out_dtype=jnp.float32,
                                    lane_dense_out=False):
    """edge_length: (N,) -> (N, num_radial) = SphericalBesselBasis(d) * PolynomialCutoff(d).

    If lane_dense_out=True the (num_radial, N) layout is returned instead, letting a fused
    downstream contraction over the radial axis skip the transpose / extra HBM round trip.
    """
    assert float(p) == int(p) and int(p) >= 2, "integer p >= 2 expected"
    p_int = int(p)
    n = edge_length.shape[0]
    num_radial = frequencies.shape[-1]

    norm_const = math.sqrt(2.0 / float(r_max) ** 3)
    inv_r_max = 1.0 / float(r_max)

    # --- tiling: edges on the 128-wide lane axis, radial index on sublanes ---------------
    # Pad N only to a multiple of 128; then size the tile from the step count so padding
    # never approaches a full (large) tile.
    n_pad128 = _round_up(max(n, 1), 128)

    # VMEM cap: double-buffered input row + output block (f32 compute, out_dtype store).
    out_itemsize = jnp.dtype(out_dtype).itemsize
    bytes_per_edge = 2 * (4 + num_radial * out_itemsize)          # 2x for double buffering
    vmem_budget = 16 * 1024 * 1024                                # safe on v5e/v6e/v7x defaults
    tile_cap_vmem = max(128, (vmem_budget // bytes_per_edge) // 128 * 128)

    max_tile = max(128, min(_round_up(int(tile_edges), 128), tile_cap_vmem, n_pad128))
    steps = _cdiv(n_pad128, max_tile)
    if n_pad128 >= 256:
        steps = max(steps, 2)                 # keep >=2 steps so v7x's 2 TCs both get work
    tile = _round_up(_cdiv(n_pad128, steps), 128)
    n_pad = steps * tile                      # pad overshoot bounded by ~128*steps edges

    d_row = jnp.pad(edge_length.astype(jnp.float32).reshape(-1),
                    (0, n_pad - n), constant_values=1.0).reshape(1, n_pad)
    freq_col = frequencies.astype(jnp.float32).reshape(num_radial, 1)

    kernel = _make_kernel(norm_const, inv_r_max, p_int)

    out_t = pl.pallas_call(
        kernel,
        out_shape=jax.ShapeDtypeStruct((num_radial, n_pad), out_dtype),
        grid=(steps,),
        in_specs=[
            pl.BlockSpec((1, tile), lambda i: (0, i)),            # d, lane-dense row
            pl.BlockSpec((num_radial, 1), lambda i: (0, 0)),      # frequencies (resident)
        ],
        out_specs=pl.BlockSpec((num_radial, tile), lambda i: (0, i)),
        compiler_params=pltpu.CompilerParams(
            dimension_semantics=("parallel",)),                    # megacore sharding (v7x)
    )(d_row, freq_col)

    if lane_dense_out:
        return out_t[:, :n]                   # (num_radial, N) — consumer contracts over R
    # Module's (num_edges, num_radial) layout; one XLA transpose in the wrapper.
    return out_t[:, :n].T


def spherical_radial_basis_edge_encoding(pos, edge_index, frequencies, *, r_max, p=6):
    # TODO(synk): the AtomicDataDict plumbing / with_edge_vectors bookkeeping has no clean
    # Pallas equivalent; the edge-vector gather + norm is done here in plain JAX, only the
    # dense basis*cutoff hot path runs in the Pallas kernel.
    src, dst = edge_index[0], edge_index[1]
    edge_vec = pos[dst] - pos[src]
    edge_length = jnp.sqrt(jnp.sum(edge_vec * edge_vec, axis=-1))
    return spherical_bessel_edge_embedding(edge_length, frequencies, r_max=r_max, p=p)


def _reference(edge_length, frequencies, r_max, p=6):
    d = edge_length.astype(jnp.float32)
    norm_const = math.sqrt(2.0 / float(r_max) ** 3)
    basis = norm_const / d[:, None] * jnp.sin(frequencies[None, :] * d[:, None])
    pf = float(p)
    x = d / r_max
    env = (1.0
           - (pf + 1.0) * (pf + 2.0) / 2.0 * jnp.power(x, pf)
           + pf * (pf + 2.0) * jnp.power(x, pf + 1.0)
           - pf * (pf + 1.0) / 2.0 * jnp.power(x, pf + 2.0))
    env = env * (x < 1.0)
    return basis * env[:, None]


if __name__ == "__main__":
    num_radial = 8
    r_max = 5.0        # cutoff radius (Angstrom), used by both basis norm and cutoff
    p = 6              # PolynomialCutoff exponent
    num_nodes = 32
    num_edges = 500    # deliberately not a multiple of 128 to exercise padding

    key = jax.random.PRNGKey(0)
    k_pos, k_edge = jax.random.split(key)
    pos = jax.random.uniform(k_pos, (num_nodes, 3), dtype=jnp.float32,
                             minval=0.0, maxval=4.0)
    edge_index = jax.random.randint(k_edge, (2, num_edges), 0, num_nodes)
    src, dst = edge_index[0], edge_index[1]
    dst = jnp.where(dst == src, (dst + 1) % num_nodes, dst)   # avoid zero-length self edges
    edge_index = jnp.stack([src, dst])

    # Trainable parameter of SphericalBesselBasis: pi * arange(1, num_radial + 1).
    frequencies = jnp.asarray(np.pi * np.arange(1, num_radial + 1, dtype=np.float32),
                              dtype=jnp.float32)

    out = spherical_radial_basis_edge_encoding(pos, edge_index, frequencies,
                                               r_max=r_max, p=p)
    out = jax.block_until_ready(out)
    assert out.shape == (num_edges, num_radial)

    edge_length = jnp.sqrt(jnp.sum((pos[dst] - pos[src]) ** 2, axis=-1))
    ref = _reference(edge_length, frequencies, r_max, p=p)
    np.testing.assert_allclose(np.asarray(out), np.asarray(ref), rtol=1e-4, atol=1e-5)

    print("KERNEL_OK")
</pallas_src>

<mosaic_0001>
module attributes {stable_mosaic.version = 11 : i64} {
  func.func @kernel(%arg0: i32, %arg1: memref<1x256xf32, #tpu.memory_space<vmem>>, %arg2: memref<8x1xf32, #tpu.memory_space<vmem>>, %arg3: memref<8x256xf32, #tpu.memory_space<vmem>>) attributes {dimension_semantics = [#tpu.dimension_semantics<parallel>], iteration_bounds = array<i64: 2>, scalar_prefetch = 0 : i64, scratch_operands = 0 : i64, tpu.core_type = #tpu.core_type<tc>, window_params = [{transform_indices = @transform_0, window_bounds = array<i64: 1, 256>}, {pipeline_mode = #tpu.pipeline_mode<synchronous>, transform_indices = @transform_1, window_bounds = array<i64: 8, 1>}, {transform_indices = @transform_2, window_bounds = array<i64: 8, 256>}]} {
    %c0 = arith.constant 0 : index
    %c0_0 = arith.constant 0 : index
    %0 = vector.load %arg1[%c0, %c0_0] : memref<1x256xf32, #tpu.memory_space<vmem>>, vector<1x256xf32>
    %cst = arith.constant 2.000000e-01 : f32
    %1 = vector.broadcast %cst : f32 to vector<1x256xf32>
    %2 = arith.mulf %0, %1 : vector<1x256xf32>
    %3 = arith.mulf %2, %2 : vector<1x256xf32>
    %4 = arith.mulf %3, %3 : vector<1x256xf32>
    %5 = arith.mulf %3, %4 : vector<1x256xf32>
    %cst_1 = arith.constant 2.100000e+01 : f32
    %6 = vector.broadcast %cst_1 : f32 to vector<1x256xf32>
    %7 = arith.mulf %6, %2 : vector<1x256xf32>
    %cst_2 = arith.constant 4.800000e+01 : f32
    %8 = vector.broadcast %cst_2 : f32 to vector<1x256xf32>
    %9 = arith.subf %8, %7 : vector<1x256xf32>
    %10 = arith.mulf %2, %9 : vector<1x256xf32>
    %cst_3 = arith.constant 2.800000e+01 : f32
    %11 = vector.broadcast %cst_3 : f32 to vector<1x256xf32>
    %12 = arith.subf %11, %10 : vector<1x256xf32>
    %13 = arith.mulf %5, %12 : vector<1x256xf32>
    %cst_4 = arith.constant 1.000000e+00 : f32
    %14 = vector.broadcast %cst_4 : f32 to vector<1x256xf32>
    %15 = arith.subf %14, %13 : vector<1x256xf32>
    %cst_5 = arith.constant 1.000000e+00 : f32
    %16 = vector.broadcast %cst_5 : f32 to vector<1x256xf32>
    %17 = arith.cmpf olt, %2, %16 : vector<1x256xf32>
    %cst_6 = arith.constant 0.000000e+00 : f32
    %18 = vector.broadcast %cst_6 : f32 to vector<1x256xf32>
    %19 = arith.select %17, %15, %18 : vector<1x256xi1>, vector<1x256xf32>
    %20 = tpu.reciprocal %0 {approx = true} : vector<1x256xf32> -> vector<1x256xf32>
    %21 = arith.mulf %0, %20 : vector<1x256xf32>
    %cst_7 = arith.constant 2.000000e+00 : f32
    %22 = vector.broadcast %cst_7 : f32 to vector<1x256xf32>
    %23 = arith.subf %22, %21 : vector<1x256xf32>
    %24 = arith.mulf %20, %23 : vector<1x256xf32>
    %cst_8 = arith.constant 0.1264911 : f32
    %25 = vector.broadcast %cst_8 : f32 to vector<1x256xf32>
    %26 = arith.mulf %25, %19 : vector<1x256xf32>
    %27 = arith.mulf %26, %24 : vector<1x256xf32>
    %c0_9 = arith.constant 0 : index
    %c0_10 = arith.constant 0 : index
    %28 = vector.load %arg2[%c0_9, %c0_10] : memref<8x1xf32, #tpu.memory_space<vmem>>, vector<8x1xf32>
    %29 = vector.broadcast %28 : vector<8x1xf32> to vector<8x256xf32>
    %30 = vector.broadcast %0 : vector<1x256xf32> to vector<8x256xf32>
    %31 = arith.mulf %29, %30 : vector<8x256xf32>
    %32 = math.sin %31 : vector<8x256xf32>
    %33 = vector.broadcast %27 : vector<1x256xf32> to vector<8x256xf32>
    %34 = arith.mulf %33, %32 : vector<8x256xf32>
    %c0_11 = arith.constant 0 : index
    %c0_12 = arith.constant 0 : index
    %35 = vector.load %arg3[%c0_11, %c0_12] : memref<8x256xf32, #tpu.memory_space<vmem>>, vector<8x256xf32>
    tpu.vector_store %arg3[%c0_11, %c0_12], %34 {strides = array<i32>} : memref<8x256xf32, #tpu.memory_space<vmem>>, vector<8x256xf32>,
    return
  }
  func.func @transform_0(%arg0: i32) -> (i32, i32) {
    %c0_i32 = arith.constant 0 : i32
    %c0_i32_0 = arith.constant 0 : i32
    return %c0_i32, %arg0 : i32, i32
  }
  func.func @transform_1(%arg0: i32) -> (i32, i32) {
    %c0_i32 = arith.constant 0 : i32
    %c0_i32_0 = arith.constant 0 : i32
    %c0_i32_1 = arith.constant 0 : i32
    return %c0_i32, %c0_i32_0 : i32, i32
  }
  func.func @transform_2(%arg0: i32) -> (i32, i32) {
    %c0_i32 = arith.constant 0 : i32
    %c0_i32_0 = arith.constant 0 : i32
    return %c0_i32, %arg0 : i32, i32
  }
}

</mosaic_0001>

<bundles_post_ra>
// kernel: tpu_custom_call.1
= control target key start
LH: loop header
LB: loop body
LE: loop exit
PB: predicated region body
PF: predicated region fallthrough
CT: control target
= control target key end

     0   :  { %7 = vsyncpa [#allocation3], 0  ;;  %s853_s0 = inlined_call_operand.vmem [shape: f32[1,512], index: 0, kind: input, shape index: {}]   ;;  %s854_s1 = inlined_call_operand.vmem [shape: f32[8,1], index: 1, kind: input, shape index: {}]   ;;  %s855_s2 = inlined_call_operand.hbm [shape: f32[8,512], index: 2, kind: output, shape index: {}]  }
   0x1   :  { %9 = vsyncpa [#allocation3 + $0x1], 0  ;;  %s646_s9 = smov 0   ;;  %s648_s10 = smov 0  }
   0x2   :  { %s650_s11 = smov 0   ;;  %s652_s12 = smov 0  }
   0x3 LB: > { %s667_s13 = sadd.s32 4294967295, %s621_s12   ;;  %s474_s14 = sadd.s32 4294967294, %s621_s12   ;;  %s621_s12 = sphi %s652_s12, %s861_s12   ;;  %s617_s11 = sphi %s650_s11, %s860_s11   ;;  %s613_s10 = sphi %s648_s10, %s859_s10   ;;  %s609_s9 = sphi %s646_s9, %s858_s9  }
   0x4   : > { %s671_s15 = sadd.s32 1, %s621_s12   ;;  %s69_s16 = sadd.s32 1, %s617_s11 }
   0x5   : > { %s66_s17 = ssub.s32 %s621_s12, %s671_s15  ;;  %p79_p0 = scmp.ne.s32.totalorder %s617_s11, %s613_s10 }
   0x6   : > { %p67_p1 = scmp.eq.s32.totalorder %s66_s17, 0  ;;  %p80_p2 = scmp.eq.s32.totalorder %s667_s13, 1 }
   0x7   : > { %p85_p3 = scmp.ne.s32.totalorder %s613_s10, %s609_s9  ;;  %p86_p4 = scmp.eq.s32.totalorder %s474_s14, 1 }
   0x8   : > { %s682_s18 = scalar_select %p67_p1, %s617_s11, %s69_s16  }
   0x9   : > { %p684_p5 = por %p80_p2, %p79_p0  ;;  %p688_p6 = por %p86_p4, %p85_p3 }
   0xa   : > { %p477_p7 = scmp.ge.s32.totalorder %s621_s12, 1  ;;  %p115_p8 = scmp.lt.s32.totalorder %s621_s12, 3 }
   0xc   : > { %p116_p9 = pnand %p477_p7, %p115_p8 }
   0xd   : > { %v161_v0 = vld [vmem:[%s854_s1] sm:$0xff] (!%p116_p9)  ;;  %v623_v1 = vmov (!%p116_p9), 0   ;;  %s479_s23 = sshll.u32 (!%p116_p9), %s667_s13, 1  ;;  %v168_v2 = vlaneseq (!%p116_p9)  ;;  %v624_v32 = vmov (!%p116_p9), 683565275   ;;  %s133_s27 = sand.u32 (!%p116_p9), 1, %s613_s10  }
   0xe   : > { %119 = sbr.rel (%p116_p9) target bundleno = 250 (0xfa), region = 28  ;;  %548 = vset.pattern.permute.xlu0 (!%p116_p9), %v623_v1  ;;  %p137_p10 = scmp.lt.s32.totalorder (!%p116_p9), %s479_s23, 3  ;;  %v625_v36 = vmov (!%p116_p9), 2475754826   ;;  %v626_v38 = vmov (!%p116_p9), 2131351028  }
   0xf   : > { %164 = vperm.xlu0 (!%p116_p9), %548, %v161_v0   ;;  %v698_v3 = vshrl.u32 (!%p116_p9), %v168_v2, 7  ;;  %v627_v40 = vmov (!%p116_p9), 2102212464   ;;  %v628_v42 = vmov (!%p116_p9), 920167782   ;;  %s478_s28 = sshll.u32 (!%p116_p9), %s133_s27, 4 }
  0x10   : > { %v629_v49 = vmov (!%p116_p9), 1326507024   ;;  %s135_s29 = scalar_lea.vmem (!%p116_p9), [#allocation2], %s478_s28  ;;  %s493_s30 = sshll.u32 (!%p116_p9), %s667_s13, 8 }
  0x11   : > { %v170_v4 = vsub.s32 (!%p116_p9), 0, %v698_v3  ;;  %v174_v5 = vsub.s32 (!%p116_p9), 1, %v698_v3  ;;  %s418_s3 = sshll.u32 (!%p116_p9), %s135_s29, 4  ;;  %s809_s6 = scalar_lea.hbm (!%p116_p9), %s855_s2, %s493_s30  ;;  %s811_s3 = int_to_ptr.vmem [resolvable:$true] %s418_s3 }
  0x12   : > { %s404_s7 = scalar_lea.sflag (!%p116_p9), [#allocation3], %s133_s27  ;;  %s559_s8 = scalar_lea.vmem (!%p116_p9), %s811_s3, 256 }
  0x13   : > { %p560_p11 = scmp.ne.s32.totalorder (!%p116_p9), %s811_s3, %s559_s8  ;;  %s630_s13 = smov (!%p116_p9), [#allocation2]  }
  0x14   : > { %s563_s14 = sshll.u32 (!%p116_p9), %s630_s13, 4  ;;  %s564_s14 = int_to_ptr.vmem [resolvable:$false] %s563_s14 }
  0x15   : > { %s863_s23 = smov (!%p137_p10, %s479_s23), 3  ;;  %p561_p12 = pnand %p560_p11, %p684_p5 }
  0x16   : > { %s139_s26 = scalar_lea.vmem %s853_s0, %s863_s23  ;;  %s565_s16 = scalar_lea.vmem %s564_s14, 512 }
  0x17   : > { %v705_v6 = vld [vmem:[%s139_s26] sm:$0x3]  ;;  %p562_p13 = pneg %p561_p12  ;;  %p566_p0 = scmp.lt.s32.totalorder %s811_s3, %s564_s14 }
  0x18   : > { %v171_v7 = vrot.slane %v705_v6, %v170_v4  ;;  %v175_v8 = vrot.slane %v705_v6, %v174_v5  ;;  %549 = vrcp.f32 %v705_v6  ;;  %p567_p1 = scmp.lt.s32.totalorder %s565_s16, %s559_s8 }
  0x1a   : > { %p568_p2 = por %p567_p1, %p566_p0 }
  0x1c   : > { %p569_p3 = pnand %p568_p2, %p562_p13 }
  0x8e   : > { %v165_v9 = vpop.permute.xlu0 %164 }
  0x8f   : > { %v713_v10 = vmul.f32 %v171_v7, %v165_v9  ;;  %v715_v11 = vmul.f32 %v175_v8, %v165_v9 }
  0x91   : > { %v180_v12 = vand.u32 2147483647, %v713_v10  ;;  %v183_v13 = vand.u32 2139095040, %v713_v10  ;;  %v287_v14 = vand.u32 2139095040, %v715_v11  ;;  %v284_v17 = vand.u32 2147483647, %v715_v11 }
  0x92   : > { %vm182_vm14 = vcmp.lt.s32.totalorder %v713_v10, 0 }
  0x93   : > { %v184_v15 = vshrl.u32 %v183_v13, 23  ;;  %v187_v16 = vand.u32 8388607, %v180_v12  ;;  %v288_v18 = vshrl.u32 %v287_v14, 23  ;;  %v725_v23 = vand.u32 8388607, %v284_v17 }
  0x94   : > { %vm181_vm15 = vcmp.le.f32.partialorder %v180_v12, 0.7853982 }
  0x95   : > { %v480_v19 = vadd.s32 4294967169, %v184_v15  ;;  %v484_v20 = vadd.s32 4294967169, %v288_v18  ;;  %v188_v22 = vor.u32 8388608, %v187_v16  ;;  %v292_v30 = vor.u32 8388608, %v725_v23 }
  0x97   : > { %v190_v21 = vadd.s32 1, %v480_v19  ;;  %v294_v24 = vadd.s32 1, %v484_v20  ;;  %v727_v29 = vshll.u32 %v188_v22, 8 }
  0x99   : > { %vm191_vm0 = vcmp.gt.s32.totalorder %v190_v21, 0  ;;  %vm295_vm1 = vcmp.gt.s32.totalorder %v294_v24, 0 }
  0x9a   : > { %v192_v25 = vsel %vm191_vm0, %v190_v21, 0  ;;  %v296_v28 = vsel %vm295_vm1, %v294_v24, 0  ;;  %vm286_vm1 = vcmp.lt.s32.totalorder %v715_v11, 0 }
  0x9b   : > { %v193_v26 = vshrl.u32 %v192_v25, 5  ;;  %v194_v27 = vand.u32 31, %v192_v25  ;;  %v730_v34 = vshrl.u32 %v296_v28, 5  ;;  %v298_v35 = vand.u32 31, %v296_v28 }
  0x9d   : > { %v195_v31 = vsub.s32 32, %v194_v27  ;;  %v197_v33 = vshll.u32 %v624_v32, %v194_v27  ;;  %v200_v37 = vshll.u32 %v625_v36, %v194_v27  ;;  %v203_v39 = vshll.u32 %v626_v38, %v194_v27 }
  0x9e   : > { %v206_v41 = vshll.u32 %v627_v40, %v194_v27  ;;  %v209_v43 = vshll.u32 %v628_v42, %v194_v27  ;;  %vm212_vm2 = vcmp.lt.s32.totalorder %v193_v26, 1  ;;  %vm213_vm3 = vcmp.lt.s32.totalorder %v193_v26, 2 }
  0x9f   : > { %v198_v44 = vshrl.u32 %v625_v36, %v195_v31  ;;  %v201_v45 = vshrl.u32 %v626_v38, %v195_v31  ;;  %v204_v46 = vshrl.u32 %v627_v40, %v195_v31  ;;  %v196_v47 = vshrl.u32 %v624_v32, %v195_v31 }
  0xa0   : > { %v207_v48 = vshrl.u32 %v628_v42, %v195_v31  ;;  %v210_v50 = vshrl.u32 %v629_v49, %v195_v31  ;;  %v299_v54 = vsub.s32 32, %v298_v35  ;;  %vm214_vm4 = vcmp.lt.s32.totalorder %v193_v26, 3 }
  0xa1   : > { %v199_v51 = vor.u32 %v198_v44, %v197_v33  ;;  %v202_v52 = vor.u32 %v201_v45, %v200_v37  ;;  %v205_v53 = vor.u32 %v204_v46, %v203_v39  ;;  %vm215_vm5 = vcmp.lt.s32.totalorder %v193_v26, 4 }
  0xa2   : > { %v208_v55 = vor.u32 %v207_v48, %v206_v41  ;;  %v211_v56 = vor.u32 %v210_v50, %v209_v43  ;;  %v301_v0 = vshll.u32 %v624_v32, %v298_v35  ;;  %v302_v7 = vshrl.u32 %v625_v36, %v299_v54 }
  0xa3   : > { %v216_v57 = vsel %vm212_vm2, %v196_v47, %v199_v51  ;;  %v217_v58 = vsel %vm215_vm5, %v205_v53, 2102212464  ;;  %v220_v59 = vsel %vm212_vm2, %v199_v51, %v202_v52  ;;  %v224_v60 = vsel %vm212_vm2, %v202_v52, %v205_v53 }
  0xa4   : > { %v218_v61 = vsel %vm214_vm4, %v202_v52, %v217_v58  ;;  %v221_v62 = vsel %vm215_vm5, %v208_v55, 920167782  ;;  %v225_v63 = vsel %vm215_vm5, %v211_v56, 1326507024  ;;  %v304_v8 = vshll.u32 %v625_v36, %v298_v35 }
  0xa5   : > { %v222_v1 = vsel %vm214_vm4, %v205_v53, %v221_v62  ;;  %v226_v2 = vsel %vm214_vm4, %v208_v55, %v225_v63  ;;  %v219_v9 = vsel %vm213_vm3, %v216_v57, %v218_v61  ;;  %v305_v15 = vshrl.u32 %v626_v38, %v299_v54 }
  0xa6   : > { %v223_v13 = vsel %vm213_vm3, %v220_v59, %v222_v1  ;;  %v227_v14 = vsel %vm213_vm3, %v224_v60, %v226_v2  ;;  %v303_v21 = vor.u32 %v302_v7, %v301_v0  ;;  %v307_v23 = vshll.u32 %v626_v38, %v298_v35 }
  0xa7   : > { %v739_v16 = vmul.u32.u64.low %v727_v29, %v227_v14  ;;  %v740_v18 = vmul.u32.u64.high %v727_v29, %v227_v14, %v739_v16  ;;  %v743_v19 = vmul.u32.u64.low %v727_v29, %v223_v13  ;;  %v744_v20 = vmul.u32.u64.high %v727_v29, %v223_v13, %v743_v19 }
  0xa8   : > { %v306_v22 = vor.u32 %v305_v15, %v304_v8  ;;  %v308_v24 = vshrl.u32 %v627_v40, %v299_v54  ;;  %v310_v25 = vshll.u32 %v627_v40, %v298_v35  ;;  %v311_v27 = vshrl.u32 %v628_v42, %v299_v54 }
  0xa9   : > { %v314_v28 = vshrl.u32 %v629_v49, %v299_v54  ;;  %v332_v31 = vshll.u32 %v292_v30, 8  ;;  %v235_v26 = vmul.u32 %v727_v29, %v219_v9  ;;  %v300_v33 = vshrl.u32 %v624_v32, %v299_v54 }
  0xaa   : > { %v309_v36 = vor.u32 %v308_v24, %v307_v23  ;;  %v313_v37 = vshll.u32 %v628_v42, %v298_v35  ;;  %vm237_vm6 = vc.u32 %v740_v18, %v743_v19  ;;  %v238_v39 = vadd.s32 1, %v744_v20 }
  0xab   : > { %v312_v41 = vor.u32 %v311_v27, %v310_v25  ;;  %vm316_vm7 = vcmp.lt.s32.totalorder %v730_v34, 1  ;;  %vm318_vm8 = vcmp.lt.s32.totalorder %v730_v34, 3  ;;  %vm319_vm9 = vcmp.lt.s32.totalorder %v730_v34, 4 }
  0xac   : > { %v315_v43 = vor.u32 %v314_v28, %v313_v37  ;;  %v324_v38 = vsel %vm316_vm7, %v303_v21, %v306_v22  ;;  %v239_v30 = vsel %vm237_vm6, %v238_v39, %v744_v20  ;;  %v321_v29 = vsel %vm319_vm9, %v309_v36, 2102212464 }
  0xad   : > { %v325_v32 = vsel %vm319_vm9, %v312_v41, 920167782  ;;  %v328_v40 = vsel %vm316_vm7, %v306_v22, %v309_v36  ;;  %v240_v35 = vadd.s32 %v239_v30, %v235_v26  ;;  %vm317_vm10 = vcmp.lt.s32.totalorder %v730_v34, 2 }
  0xae   : > { %v326_v42 = vsel %vm318_vm8, %v309_v36, %v325_v32  ;;  %v329_v44 = vsel %vm319_vm9, %v315_v43, 1326507024  ;;  %v320_v45 = vsel %vm316_vm7, %v300_v33, %v303_v21  ;;  %v322_v46 = vsel %vm318_vm8, %v306_v22, %v321_v29 }
  0xaf   : > { %v327_v47 = vsel %vm317_vm10, %v324_v38, %v326_v42  ;;  %v330_v48 = vsel %vm318_vm8, %v312_v41, %v329_v44  ;;  %v241_v49 = vadd.s32 536870912, %v240_v35  ;;  %v323_v56 = vsel %vm317_vm10, %v320_v45, %v322_v46 }
  0xb0   : > { %v331_v50 = vsel %vm317_vm10, %v328_v40, %v330_v48  ;;  %v756_v51 = vmul.u32.u64.low %v332_v31, %v327_v47  ;;  %v757_v52 = vmul.u32.u64.high %v332_v31, %v327_v47, %v756_v51  ;;  %v339_v58 = vmul.u32 %v332_v31, %v323_v56 }
  0xb1   : > { %v759_v53 = vmul.u32.u64.low %v332_v31, %v331_v50  ;;  %v760_v54 = vmul.u32.u64.high %v332_v31, %v331_v50, %v759_v53  ;;  %v762_v55 = vshrl.u32 %v241_v49, 30  ;;  %v769_v62 = vmul.f32 0.2, %v705_v6 }
  0xb2   : > { %v342_v34 = vadd.s32 1, %v757_v52  ;;  %v236_v22 = vadd.s32 %v743_v19, %v740_v18  ;;  %v550_v19 = vpop.eup %549  ;;  %vm285_vm2 = vcmp.le.f32.partialorder %v284_v17, 0.7853982  ;;  %vm272_vm6 = vweird.f32 %v713_v10 }
  0xb3   : > { %v243_v57 = vshll.u32 %v762_v55, 30  ;;  %vm341_vm11 = vc.u32 %v760_v54, %v756_v51  ;;  %v147_v7 = vmul.f32 21.0, %v769_v62  ;;  %v144_v14 = vmul.f32 %v769_v62, %v769_v62 }
  0xb4   : > { %v343_v60 = vsel %vm341_vm11, %v342_v34, %v757_v52  ;;  %v340_v40 = vadd.s32 %v756_v51, %v760_v54  ;;  %v266_v46 = vsub.s32 4, %v762_v55  ;;  %v156_v50 = vmul.f32 %v550_v19, %v705_v6 }
  0xb5   : > { %v244_v59 = vsub.s32 %v240_v35, %v243_v57  ;;  %v344_v61 = vadd.s32 %v343_v60, %v339_v58  ;;  %v148_v16 = vsub.f32 48.0, %v147_v7  ;;  %v145_v25 = vmul.f32 %v144_v14, %v144_v14 }
  0xb6   : > { %v267_v54 = vsel %vm182_vm14, %v266_v46, %v762_v55  ;;  %vm153_vm0 = vcmp.lt.f32.partialorder %v769_v62, 1.0  ;;  %vm376_vm10 = vweird.f32 %v715_v11 }
  0xb7   : > { %v246_v63 = vsub.s32 0, %v244_v59  ;;  %v345_v0 = vadd.s32 536870912, %v344_v61  ;;  %v149_v28 = vmul.f32 %v148_v16, %v769_v62  ;;  %v146_v43 = vmul.f32 %v145_v25, %v144_v14 }
  0xb8   : > { %v269_v6 = vsel %vm181_vm15, 0, %v267_v54 }
  0xb9   : > { %v481_v1 = vmin.u32 %v246_v63, %v244_v59  ;;  %v771_v2 = vshrl.u32 %v345_v0, 30  ;;  %v150_v38 = vsub.f32 28.0, %v149_v28  ;;  %v273_v12 = vadd.s32 3, %v269_v6 }
  0xbb   : > { %v248_v8 = vclz %v481_v1  ;;  %v347_v9 = vshll.u32 %v771_v2, 30  ;;  %v151_v44 = vmul.f32 %v150_v38, %v146_v43  ;;  %v370_v1 = vsub.s32 4, %v771_v2 }
  0xbc   : > { %v274_v14 = vand.u32 3, %v273_v12 }
  0xbd   : > { %v482_v13 = vadd.s32 4294967294, %v248_v8  ;;  %v348_v15 = vsub.s32 %v344_v61, %v347_v9  ;;  %v152_v57 = vsub.f32 1.0, %v151_v44  ;;  %v371_v9 = vsel %vm286_vm1, %v370_v1, %v771_v2 }
  0xbe   : > { %vm279_vm3 = vcmp.eq.s32.totalorder %v274_v14, 2  ;;  %vm276_vm4 = vcmp.eq.s32.totalorder %v274_v14, 0  ;;  %vm275_vm5 = vcmp.lt.s32.totalorder %v274_v14, 2 }
  0xbf   : > { %vm483_vm12 = vcmp.lt.s32.totalorder %v482_v13, 0  ;;  %v350_v21 = vsub.s32 0, %v348_v15  ;;  %v154_v63 = vsel %vm153_vm0, %v152_v57, 0.0 }
  0xc0   : > { %v251_v20 = vsel %vm483_vm12, 0, %v482_v13  ;;  %v159_v8 = vmul.f32 0.1264911, %v154_v63 }
  0xc1   : > { %v252_v23 = vsub.s32 32, %v251_v20  ;;  %v256_v24 = vsub.s32 4294967266, %v251_v20  ;;  %v485_v27 = vmin.u32 %v350_v21, %v348_v15  ;;  %v253_v31 = vshll.u32 %v244_v59, %v251_v20 }
  0xc2   : > { %v157_v59 = vsub.f32 2.0, %v156_v50  ;;  %v373_v20 = vsel %vm285_vm2, 0, %v371_v9 }
  0xc3   : > { %v254_v26 = vshrl.u32 %v236_v22, %v252_v23  ;;  %v257_v33 = vadd.s32 127, %v256_v24  ;;  %v352_v36 = vclz %v485_v27  ;;  %v377_v24 = vadd.s32 3, %v373_v20 }
  0xc4   : > { %v158_v7 = vmul.f32 %v550_v19, %v157_v59 }
  0xc5   : > { %v255_v37 = vor.u32 %v254_v26, %v253_v31  ;;  %v258_v39 = vshll.u32 %v257_v33, 23  ;;  %v486_v41 = vadd.s32 4294967294, %v352_v36  ;;  %v378_v31 = vand.u32 3, %v377_v24 }
  0xc7   : > { %v259_v30 = vor.u32 4788187, %v258_v39  ;;  %vm487_vm13 = vcmp.lt.s32.totalorder %v486_v41, 0  ;;  %v262_v32 = vcvt.s32.f32 %v255_v37  ;;  %vm383_vm7 = vcmp.eq.s32.totalorder %v378_v31, 2 }
  0xc8   : > { %v355_v18 = vsel %vm487_vm13, 0, %v486_v41  ;;  %vm380_vm8 = vcmp.eq.s32.totalorder %v378_v31, 0  ;;  %vm379_vm9 = vcmp.lt.s32.totalorder %v378_v31, 2 }
  0xc9   : > { %v260_v29 = vand.u32 2147483647, %v259_v30  ;;  %v356_v35 = vsub.s32 32, %v355_v18  ;;  %v360_v42 = vsub.s32 4294967266, %v355_v18  ;;  %v357_v47 = vshll.u32 %v348_v15, %v355_v18 }
  0xca   : > { %v160_v15 = vmul.f32 %v159_v8, %v158_v7 }
  0xcb   : > { %v263_v45 = vmul.f32 %v262_v32, %v260_v29  ;;  %v358_v48 = vshrl.u32 %v340_v40, %v356_v35  ;;  %v361_v49 = vadd.s32 127, %v360_v42 }
  0xcc   : > { %v392_v17 = vrot.slane %v160_v15, %v170_v4  ;;  %v396_v4 = vrot.slane %v160_v15, %v174_v5 }
  0xcd   : > { %v264_v52 = vxor.u32 2147483648, %v263_v45  ;;  %v359_v53 = vor.u32 %v358_v48, %v357_v47  ;;  %v362_v56 = vshll.u32 %v361_v49, 23 }
  0xcf   : > { %v265_v51 = vsel %vm182_vm14, %v264_v52, %v263_v45  ;;  %v363_v58 = vor.u32 4788187, %v362_v56  ;;  %v366_v61 = vcvt.s32.f32 %v359_v53 }
  0xd0   : > { %v268_v34 = vsel %vm181_vm15, %v713_v10, %v265_v51 }
  0xd1   : > { %551 = vcosq.f32 %v268_v34  ;;  %v364_v60 = vand.u32 2147483647, %v363_v58 }
  0xd2   : > { %553 = vsinq.f32 %v268_v34 }
  0xd3   : > { %v367_v0 = vmul.f32 %v366_v61, %v364_v60 }
  0xd5   : > { %v368_v55 = vxor.u32 2147483648, %v367_v0 }
  0xd7   : > { %v369_v62 = vsel %vm286_vm1, %v368_v55, %v367_v0 }
  0xd8   : > { %v372_v13 = vsel %vm285_vm2, %v715_v11, %v369_v62 }
  0xd9   : > { %555 = vcosq.f32 %v372_v13 }
  0xda   : > { %557 = vsinq.f32 %v372_v13 }
  0xdb   : > { %v552_v16 = vpop.eup %551 }
  0xdc   : > { %v554_v21 = vpop.eup %553  ;;  %v280_v22 = vxor.u32 2147483648, %v552_v16 }
  0xdd   : > { %v277_v23 = vxor.u32 2147483648, %v554_v21 }
  0xde   : > { %v281_v2 = vsel %vm279_vm3, %v280_v22, %v554_v21 }
  0xdf   : > { %v278_v25 = vsel %vm276_vm4, %v552_v16, %v277_v23 }
  0xe0   : > { %v282_v27 = vsel %vm275_vm5, %v278_v25, %v281_v2 }
  0xe1   : > { %v283_v28 = vsel %vm272_vm6, nan, %v282_v27 }
  0xe2   : > { %v399_v26 = vmul.f32 %v392_v17, %v283_v28 }
  0xe3   : > { %v556_v33 = vpop.eup %555 }
  0xe4   : > { %401 = vst [vmem:[%s135_s29] sm:$0xff] %v399_v26  ;;  %v558_v36 = vpop.eup %557  ;;  %v384_v37 = vxor.u32 2147483648, %v556_v33 }
  0xe5   : > { %v381_v39 = vxor.u32 2147483648, %v558_v36 }
  0xe6   : > { %v385_v41 = vsel %vm383_vm7, %v384_v37, %v558_v36 }
  0xe7   : > { %v382_v10 = vsel %vm380_vm8, %v556_v33, %v381_v39 }
  0xe8   : > { %v386_v43 = vsel %vm379_vm9, %v382_v10, %v385_v41 }
  0xe9   : > { %v387_v38 = vsel %vm376_vm10, nan, %v386_v43 }
  0xea   : > { %v400_v30 = vmul.f32 %v396_v4, %v387_v38 }
  0xec   : > { %402 = vst [vmem:[%s135_s29 + $0x8] sm:$0xff] %v400_v30 }
  0xed   : > { %572 = shalt.err (!%p569_p3)
}
  0xee   : > { %s573_s17 = scalar_lea.hbm %s809_s6, 256  ;;  %s577_s23 = scalar_lea.hbm %s855_s2, 512 }
  0xef   : > { %p574_p4 = scmp.ne.s32.totalorder %s809_s6, %s573_s17  ;;  %p578_p9 = scmp.lt.u32.totalorder %s809_s6, %s855_s2 }
  0xf0   : > { %p579_p10 = scmp.lt.u32.totalorder %s577_s23, %s573_s17  ;;  %p581_p12 = scmp.lt.u32.totalorder %s573_s17, %s809_s6 }
  0xf1   : > { %p575_p7 = pnand %p574_p4, %p684_p5 }
  0xf2   : > { %p580_p11 = por %p579_p10, %p578_p9 }
  0xf3   : > { %p576_p8 = pneg %p575_p7 }
  0xf4   : > { %p582_p13 = por %p581_p12, %p580_p11 }
  0xf6   : > { %p583_p0 = pnand %p582_p13, %p576_p8 }
  0xf8   : > { %586 = shalt.err (!%p583_p0)
}
  0xf9   : > { %502 = dma.vmem_to_hbm [thread:$0]  (%p684_p5), %s811_s3, 256, %s809_s6, %s404_s7  }
  0xfa PF: > { %p508_p1 = scmp.ge.s32.totalorder %s621_s12, 2  ;;  %s430_s26 = sand.u32 1, %s609_s9  }
  0xfb   : > { %s431_s27 = scalar_lea.sflag [#allocation3], %s430_s26 }
  0xfc   : > { %p505_p2 = pnand %p508_p1, %p688_p6 }
  0xfe   : > { %604 = dma.done.wait (!%p505_p2), %s431_s27, 256  }
  0xff   : > { %606 = vsyncadd (!%p505_p2), %s431_s27, 4294967040  ;;  %p12_p3 = scmp.ge.s32.totalorder %s671_s15, 4   ;;  %s858_s9 = smov %s613_s10 }
 0x100   : > { %s859_s10 = smov %s617_s11  ;;  %s860_s11 = smov %s682_s18 }
 0x101   : > { %s861_s12 = smov %s671_s15  ;;  %14 = sbr.rel (!%p12_p3) target bundleno = 3 (0x3), region = 63 }
 0x108   :  { %436 = vsyncpa [#allocation3], 1 }
 0x109   :  { %438 = vsyncpa [#allocation3 + $0x1], 1 }

</bundles_post_ra>
